<compile_context>
chip_gen: v6e
topology: v6e:2x2x1
jax: 0.10.0
libtpu: 0.0.40
codegen_flags: <defaults>
</compile_context>

<pallas_src>
import functools

import jax
import jax.numpy as jnp
from jax.experimental import pallas as pl
from jax.experimental.pallas import tpu as pltpu

LANE = 128


def _round_up(x, m):
    return ((x + m - 1) // m) * m


# ----------------------------- Pallas kernel -------------------------------
def gcn_layer_kernel(a_ref, x_ref, w_ref, b_ref, out_ref, acc_ref, *,
                     apply_relu):
    """One GCN layer, row-tiled over A with K-reduction over A's columns.

    out[i, :] = maybe_relu( (sum_k A[i,k] @ X[k,:]) @ W + b )
    """
    k = pl.program_id(1)

    @pl.when(k == 0)
    def _():
        acc_ref[...] = jnp.zeros_like(acc_ref)

    # (A @ X): contract the N^2 term against the narrow feature matrix.
    acc_ref[...] += jnp.dot(a_ref[...], x_ref[...],
                            preferred_element_type=jnp.float32)

    @pl.when(k == pl.num_programs(1) - 1)
    def _():
        h = jnp.dot(acc_ref[...].astype(jnp.bfloat16), w_ref[...],
                    preferred_element_type=jnp.float32) + b_ref[...]
        if apply_relu:
            h = jnp.maximum(h, 0.0)
        out_ref[...] = h.astype(out_ref.dtype)


def _gcn_layer(a_bf16, x_bf16, w_bf16, b_f32, *, apply_relu, out_dtype,
               tm=128, tk=128):
    """pallas_call wrapper for one GCN layer on padded, lane-dense operands."""
    n_pad = a_bf16.shape[0]
    c_in = x_bf16.shape[1]
    c_out = w_bf16.shape[1]
    grid = (n_pad // tm, n_pad // tk)

    kernel = functools.partial(gcn_layer_kernel, apply_relu=apply_relu)
    return pl.pallas_call(
        kernel,
        out_shape=jax.ShapeDtypeStruct((n_pad, c_out), out_dtype),
        grid_spec=pltpu.PrefetchScalarGridSpec(
            num_scalar_prefetch=0,
            grid=grid,
            in_specs=[
                pl.BlockSpec((tm, tk), lambda i, k: (i, k)),       # A tile
                pl.BlockSpec((tk, c_in), lambda i, k: (k, 0)),     # X row tile
                pl.BlockSpec((c_in, c_out), lambda i, k: (0, 0)),  # W resident
                pl.BlockSpec((1, c_out), lambda i, k: (0, 0)),     # bias
            ],
            out_specs=pl.BlockSpec((tm, c_out), lambda i, k: (i, 0)),
            scratch_shapes=[pltpu.VMEM((tm, c_in), jnp.float32)],
        ),
        compiler_params=pltpu.CompilerParams(
            dimension_semantics=("parallel", "arbitrary"),
            vmem_limit_bytes=64 * 1024 * 1024,
        ),
    )(a_bf16, x_bf16, w_bf16, b_f32)


# ------------------------------ glue (JAX) ---------------------------------
def build_norm_adj(edge_index, num_nodes):
    """Dense symmetric-normalized adjacency with self loops (PyG gcn_norm).

    Duplicate edges are scatter-added (matches message-passing), and self
    loops are only added where missing (add_remaining_self_loops semantics).
    """
    src, dst = edge_index[0], edge_index[1]
    a = jnp.zeros((num_nodes, num_nodes), jnp.float32)
    a = a.at[dst, src].add(1.0)                 # message flows src -> dst
    idx = jnp.arange(num_nodes)
    diag = a[idx, idx]
    a = a.at[idx, idx].set(jnp.where(diag > 0, diag, 1.0))
    deg = a.sum(axis=1)
    dinv = jnp.where(deg > 0, 1.0 / jnp.sqrt(deg), 0.0)
    return dinv[:, None] * a * dinv[None, :]


def gnn_forward(x, edge_index, batch, params):
    """Equivalent of GNN.forward(x, edge_index, batch) for conv_model='GCN'."""
    del batch  # unused by the reference forward
    w1, b1, w2, b2 = params
    n, c_in = x.shape
    h_dim = w1.shape[1]
    h_out = w2.shape[1]

    # pad everything to lane-dense (multiples of 128) shapes
    n_pad = _round_up(max(n, LANE), LANE)
    c_in_pad = _round_up(max(c_in, LANE), LANE)
    h_pad = _round_up(max(h_dim, LANE), LANE)
    h_out_pad = _round_up(max(h_out, LANE), LANE)

    a_hat = build_norm_adj(edge_index, n)
    a_pad = jnp.zeros((n_pad, n_pad), jnp.bfloat16)
    a_pad = a_pad.at[:n, :n].set(a_hat.astype(jnp.bfloat16))
    x_pad = jnp.zeros((n_pad, c_in_pad), jnp.bfloat16)
    x_pad = x_pad.at[:n, :c_in].set(x.astype(jnp.bfloat16))
    w1_pad = jnp.zeros((c_in_pad, h_pad), jnp.bfloat16)
    w1_pad = w1_pad.at[:c_in, :h_dim].set(w1.astype(jnp.bfloat16))
    b1_pad = jnp.zeros((1, h_pad), jnp.float32).at[0, :h_dim].set(b1)
    w2_pad = jnp.zeros((h_pad, h_out_pad), jnp.bfloat16)
    w2_pad = w2_pad.at[:h_dim, :h_out].set(w2.astype(jnp.bfloat16))
    b2_pad = jnp.zeros((1, h_out_pad), jnp.float32).at[0, :h_out].set(b2)

    tm = min(128, n_pad)
    tk = min(128, n_pad)

    # layer 1: relu(A @ X @ W1 + b1), kept in bf16 (it feeds the MXU again)
    h1 = _gcn_layer(a_pad, x_pad, w1_pad, b1_pad, apply_relu=True,
                    out_dtype=jnp.bfloat16, tm=tm, tk=tk)
    # layer 2: A @ h1 @ W2 + b2 (the returned embedding), f32 output
    out = _gcn_layer(a_pad, h1, w2_pad, b2_pad, apply_relu=False,
                     out_dtype=jnp.float32, tm=tm, tk=tk)
    return out[:n, :h_out]


def init_params(key, input_channels, hidden_channels):
    """Deterministic glorot-style init matching GCNConv weight/bias shapes."""
    k1, k2, k3, k4 = jax.random.split(key, 4)
    s1 = jnp.sqrt(2.0 / (input_channels + hidden_channels))
    s2 = jnp.sqrt(2.0 / (hidden_channels + hidden_channels))
    w1 = s1 * jax.random.normal(k1, (input_channels, hidden_channels), jnp.float32)
    b1 = 0.1 * jax.random.normal(k2, (hidden_channels,), jnp.float32)
    w2 = s2 * jax.random.normal(k3, (hidden_channels, hidden_channels), jnp.float32)
    b2 = 0.1 * jax.random.normal(k4, (hidden_channels,), jnp.float32)
    return w1, b1, w2, b2


def _reference_forward(x, edge_index, params):
    """Pure-JAX f32 reference for a sanity check."""
    w1, b1, w2, b2 = params
    a = build_norm_adj(edge_index, x.shape[0])
    h = jnp.maximum(a @ (x @ w1) + b1, 0.0)
    return a @ (h @ w2) + b2


if __name__ == "__main__":
    key = jax.random.PRNGKey(0)
    N, C_IN, C_HID = 16, 8, 32   # nodes, input_channels, hidden_channels

    kx, kp = jax.random.split(key)
    x = jax.random.normal(kx, (N, C_IN), jnp.float32)

    # deterministic graph: undirected ring
    src = jnp.arange(N, dtype=jnp.int32)
    dst = (src + 1) % N
    edge_index = jnp.stack([jnp.concatenate([src, dst]),
                            jnp.concatenate([dst, src])])     # [2, 2N]
    batch = jnp.zeros((N,), jnp.int32)                        # single graph

    params = init_params(kp, C_IN, C_HID)

    out = jax.jit(gnn_forward)(x, edge_index, batch, params)
    jax.block_until_ready(out)
    assert out.shape == (N, C_HID) and out.dtype == jnp.float32

    ref = _reference_forward(x, edge_index, params)
    assert jnp.allclose(out, ref, atol=0.1, rtol=0.1), "mismatch vs f32 reference"
    print("KERNEL_OK")
</pallas_src>

<mosaic_0001>
module attributes {stable_mosaic.version = 11 : i64} {
  func.func private @main(%arg0: i32) attributes {dimension_semantics = [#tpu.dimension_semantics<core_parallel>], iteration_bounds = array<i64: 2>, tpu.core_type = #tpu.core_type<sc_scalar_subcore>, window_params = []} {
    return
  }
}

module attributes {stable_mosaic.version = 11 : i64} {
  func.func private @main(%arg0: i32) attributes {dimension_semantics = [#tpu.dimension_semantics<core_parallel>], iteration_bounds = array<i64: 2>, tpu.core_type = #tpu.core_type<sc_scalar_subcore>, window_params = []} {
    return
  }
}

module attributes {stable_mosaic.version = 11 : i64} {
  func.func @gcn_layer_kernel(%arg0: i32, %arg1: i32, %arg2: memref<128x128xbf16, #tpu.memory_space<vmem>>, %arg3: memref<128x128xbf16, #tpu.memory_space<vmem>>, %arg4: memref<128x128xbf16, #tpu.memory_space<vmem>>, %arg5: memref<1x128xf32, #tpu.memory_space<vmem>>, %arg6: memref<128x128xbf16, #tpu.memory_space<vmem>>, %arg7: memref<128x128xf32, #tpu.memory_space<vmem>>) attributes {dimension_semantics = [#tpu.dimension_semantics<parallel>, #tpu.dimension_semantics<arbitrary>], iteration_bounds = array<i64: 1, 1>, scalar_prefetch = 0 : i64, scratch_operands = 1 : i64, tpu.core_type = #tpu.core_type<tc>, window_params = [{transform_indices = @transform_0, window_bounds = array<i64: 128, 128>}, {transform_indices = @transform_1, window_bounds = array<i64: 128, 128>}, {pipeline_mode = #tpu.pipeline_mode<synchronous>, transform_indices = @transform_2, window_bounds = array<i64: 128, 128>}, {pipeline_mode = #tpu.pipeline_mode<synchronous>, transform_indices = @transform_3, window_bounds = array<i64: 1, 128>}, {transform_indices = @transform_4, window_bounds = array<i64: 128, 128>}]} {
    %c0_i32 = arith.constant 0 : i32
    %0 = arith.cmpi eq, %arg1, %c0_i32 : i32
    %1 = arith.extui %0 : i1 to i32
    %c0_i32_0 = arith.constant 0 : i32
    %2 = arith.cmpi ne, %1, %c0_i32_0 : i32
    scf.if %2 {
      %cst_10 = arith.constant 0.000000e+00 : f32
      %12 = vector.broadcast %cst_10 : f32 to vector<128x128xf32>
      %c0_11 = arith.constant 0 : index
      %c0_12 = arith.constant 0 : index
      %13 = vector.load %arg7[%c0_11, %c0_12] : memref<128x128xf32, #tpu.memory_space<vmem>>, vector<128x128xf32>
      tpu.vector_store %arg7[%c0_11, %c0_12], %12 {strides = array<i32>} : memref<128x128xf32, #tpu.memory_space<vmem>>, vector<128x128xf32>,
    } else {
    }
    %c0 = arith.constant 0 : index
    %c0_1 = arith.constant 0 : index
    %3 = vector.load %arg7[%c0, %c0_1] : memref<128x128xf32, #tpu.memory_space<vmem>>, vector<128x128xf32>
    %c0_2 = arith.constant 0 : index
    %c0_3 = arith.constant 0 : index
    %4 = vector.load %arg2[%c0_2, %c0_3] : memref<128x128xbf16, #tpu.memory_space<vmem>>, vector<128x128xbf16>
    %c0_4 = arith.constant 0 : index
    %c0_5 = arith.constant 0 : index
    %5 = vector.load %arg3[%c0_4, %c0_5] : memref<128x128xbf16, #tpu.memory_space<vmem>>, vector<128x128xbf16>
    %cst = arith.constant dense<0.000000e+00> : vector<128x128xf32>
    %6 = tpu.matmul %4, %5, %cst {dimension_numbers = #tpu.dot_dimension_numbers<[1], [0], [0], [1], [0, 0, 1, 1], [], []>} : vector<128x128xbf16>, vector<128x128xbf16>, vector<128x128xf32> -> vector<128x128xf32>
    %7 = arith.addf %3, %6 : vector<128x128xf32>
    %c0_6 = arith.constant 0 : index
    %c0_7 = arith.constant 0 : index
    %8 = vector.load %arg7[%c0_6, %c0_7] : memref<128x128xf32, #tpu.memory_space<vmem>>, vector<128x128xf32>
    tpu.vector_store %arg7[%c0_6, %c0_7], %7 {strides = array<i32>} : memref<128x128xf32, #tpu.memory_space<vmem>>, vector<128x128xf32>,
    %c0_i32_8 = arith.constant 0 : i32
    %9 = arith.cmpi eq, %arg1, %c0_i32_8 : i32
    %10 = arith.extui %9 : i1 to i32
    %c0_i32_9 = arith.constant 0 : i32
    %11 = arith.cmpi ne, %10, %c0_i32_9 : i32
    scf.if %11 {
      %c0_10 = arith.constant 0 : index
      %c0_11 = arith.constant 0 : index
      %12 = vector.load %arg7[%c0_10, %c0_11] : memref<128x128xf32, #tpu.memory_space<vmem>>, vector<128x128xf32>
      %13 = arith.truncf %12 : vector<128x128xf32> to vector<128x128xbf16>
      %c0_12 = arith.constant 0 : index
      %c0_13 = arith.constant 0 : index
      %14 = vector.load %arg4[%c0_12, %c0_13] : memref<128x128xbf16, #tpu.memory_space<vmem>>, vector<128x128xbf16>
      %cst_14 = arith.constant dense<0.000000e+00> : vector<128x128xf32>
      %15 = tpu.matmul %13, %14, %cst_14 {dimension_numbers = #tpu.dot_dimension_numbers<[1], [0], [0], [1], [0, 0, 1, 1], [], []>} : vector<128x128xbf16>, vector<128x128xbf16>, vector<128x128xf32> -> vector<128x128xf32>
      %c0_15 = arith.constant 0 : index
      %c0_16 = arith.constant 0 : index
      %16 = vector.load %arg5[%c0_15, %c0_16] : memref<1x128xf32, #tpu.memory_space<vmem>>, vector<1x128xf32>
      %17 = vector.broadcast %16 : vector<1x128xf32> to vector<128x128xf32>
      %18 = arith.addf %15, %17 : vector<128x128xf32>
      %cst_17 = arith.constant 0.000000e+00 : f32
      %19 = vector.broadcast %cst_17 : f32 to vector<128x128xf32>
      %20 = arith.maximumf %18, %19 : vector<128x128xf32>
      %21 = arith.truncf %20 : vector<128x128xf32> to vector<128x128xbf16>
      %c0_18 = arith.constant 0 : index
      %c0_19 = arith.constant 0 : index
      %22 = vector.load %arg6[%c0_18, %c0_19] : memref<128x128xbf16, #tpu.memory_space<vmem>>, vector<128x128xbf16>
      tpu.vector_store %arg6[%c0_18, %c0_19], %21 {strides = array<i32>} : memref<128x128xbf16, #tpu.memory_space<vmem>>, vector<128x128xbf16>,
    } else {
    }
    return
  }
  func.func @transform_0(%arg0: i32, %arg1: i32) -> (i32, i32) {
    %c0_i32 = arith.constant 0 : i32
    return %arg0, %arg1 : i32, i32
  }
  func.func @transform_1(%arg0: i32, %arg1: i32) -> (i32, i32) {
    %c0_i32 = arith.constant 0 : i32
    %c0_i32_0 = arith.constant 0 : i32
    return %arg1, %c0_i32 : i32, i32
  }
  func.func @transform_2(%arg0: i32, %arg1: i32) -> (i32, i32) {
    %c0_i32 = arith.constant 0 : i32
    %c0_i32_0 = arith.constant 0 : i32
    %c0_i32_1 = arith.constant 0 : i32
    return %c0_i32, %c0_i32_0 : i32, i32
  }
  func.func @transform_3(%arg0: i32, %arg1: i32) -> (i32, i32) {
    %c0_i32 = arith.constant 0 : i32
    %c0_i32_0 = arith.constant 0 : i32
    %c0_i32_1 = arith.constant 0 : i32
    return %c0_i32, %c0_i32_0 : i32, i32
  }
  func.func @transform_4(%arg0: i32, %arg1: i32) -> (i32, i32) {
    %c0_i32 = arith.constant 0 : i32
    %c0_i32_0 = arith.constant 0 : i32
    return %arg0, %c0_i32 : i32, i32
  }
}

module attributes {stable_mosaic.version = 11 : i64} {
  func.func @gcn_layer_kernel(%arg0: i32, %arg1: i32, %arg2: memref<128x128xbf16, #tpu.memory_space<vmem>>, %arg3: memref<128x128xbf16, #tpu.memory_space<vmem>>, %arg4: memref<128x128xbf16, #tpu.memory_space<vmem>>, %arg5: memref<1x128xf32, #tpu.memory_space<vmem>>, %arg6: memref<128x128xf32, #tpu.memory_space<vmem>>, %arg7: memref<128x128xf32, #tpu.memory_space<vmem>>) attributes {dimension_semantics = [#tpu.dimension_semantics<parallel>, #tpu.dimension_semantics<arbitrary>], iteration_bounds = array<i64: 1, 1>, scalar_prefetch = 0 : i64, scratch_operands = 1 : i64, tpu.core_type = #tpu.core_type<tc>, window_params = [{transform_indices = @transform_0, window_bounds = array<i64: 128, 128>}, {transform_indices = @transform_1, window_bounds = array<i64: 128, 128>}, {pipeline_mode = #tpu.pipeline_mode<synchronous>, transform_indices = @transform_2, window_bounds = array<i64: 128, 128>}, {pipeline_mode = #tpu.pipeline_mode<synchronous>, transform_indices = @transform_3, window_bounds = array<i64: 1, 128>}, {transform_indices = @transform_4, window_bounds = array<i64: 128, 128>}]} {
    %c0_i32 = arith.constant 0 : i32
    %0 = arith.cmpi eq, %arg1, %c0_i32 : i32
    %1 = arith.extui %0 : i1 to i32
    %c0_i32_0 = arith.constant 0 : i32
    %2 = arith.cmpi ne, %1, %c0_i32_0 : i32
    scf.if %2 {
      %cst_10 = arith.constant 0.000000e+00 : f32
      %12 = vector.broadcast %cst_10 : f32 to vector<128x128xf32>
      %c0_11 = arith.constant 0 : index
      %c0_12 = arith.constant 0 : index
      %13 = vector.load %arg7[%c0_11, %c0_12] : memref<128x128xf32, #tpu.memory_space<vmem>>, vector<128x128xf32>
      tpu.vector_store %arg7[%c0_11, %c0_12], %12 {strides = array<i32>} : memref<128x128xf32, #tpu.memory_space<vmem>>, vector<128x128xf32>,
    } else {
    }
    %c0 = arith.constant 0 : index
    %c0_1 = arith.constant 0 : index
    %3 = vector.load %arg7[%c0, %c0_1] : memref<128x128xf32, #tpu.memory_space<vmem>>, vector<128x128xf32>
    %c0_2 = arith.constant 0 : index
    %c0_3 = arith.constant 0 : index
    %4 = vector.load %arg2[%c0_2, %c0_3] : memref<128x128xbf16, #tpu.memory_space<vmem>>, vector<128x128xbf16>
    %c0_4 = arith.constant 0 : index
    %c0_5 = arith.constant 0 : index
    %5 = vector.load %arg3[%c0_4, %c0_5] : memref<128x128xbf16, #tpu.memory_space<vmem>>, vector<128x128xbf16>
    %cst = arith.constant dense<0.000000e+00> : vector<128x128xf32>
    %6 = tpu.matmul %4, %5, %cst {dimension_numbers = #tpu.dot_dimension_numbers<[1], [0], [0], [1], [0, 0, 1, 1], [], []>} : vector<128x128xbf16>, vector<128x128xbf16>, vector<128x128xf32> -> vector<128x128xf32>
    %7 = arith.addf %3, %6 : vector<128x128xf32>
    %c0_6 = arith.constant 0 : index
    %c0_7 = arith.constant 0 : index
    %8 = vector.load %arg7[%c0_6, %c0_7] : memref<128x128xf32, #tpu.memory_space<vmem>>, vector<128x128xf32>
    tpu.vector_store %arg7[%c0_6, %c0_7], %7 {strides = array<i32>} : memref<128x128xf32, #tpu.memory_space<vmem>>, vector<128x128xf32>,
    %c0_i32_8 = arith.constant 0 : i32
    %9 = arith.cmpi eq, %arg1, %c0_i32_8 : i32
    %10 = arith.extui %9 : i1 to i32
    %c0_i32_9 = arith.constant 0 : i32
    %11 = arith.cmpi ne, %10, %c0_i32_9 : i32
    scf.if %11 {
      %c0_10 = arith.constant 0 : index
      %c0_11 = arith.constant 0 : index
      %12 = vector.load %arg7[%c0_10, %c0_11] : memref<128x128xf32, #tpu.memory_space<vmem>>, vector<128x128xf32>
      %13 = arith.truncf %12 : vector<128x128xf32> to vector<128x128xbf16>
      %c0_12 = arith.constant 0 : index
      %c0_13 = arith.constant 0 : index
      %14 = vector.load %arg4[%c0_12, %c0_13] : memref<128x128xbf16, #tpu.memory_space<vmem>>, vector<128x128xbf16>
      %cst_14 = arith.constant dense<0.000000e+00> : vector<128x128xf32>
      %15 = tpu.matmul %13, %14, %cst_14 {dimension_numbers = #tpu.dot_dimension_numbers<[1], [0], [0], [1], [0, 0, 1, 1], [], []>} : vector<128x128xbf16>, vector<128x128xbf16>, vector<128x128xf32> -> vector<128x128xf32>
      %c0_15 = arith.constant 0 : index
      %c0_16 = arith.constant 0 : index
      %16 = vector.load %arg5[%c0_15, %c0_16] : memref<1x128xf32, #tpu.memory_space<vmem>>, vector<1x128xf32>
      %17 = vector.broadcast %16 : vector<1x128xf32> to vector<128x128xf32>
      %18 = arith.addf %15, %17 : vector<128x128xf32>
      %c0_17 = arith.constant 0 : index
      %c0_18 = arith.constant 0 : index
      %19 = vector.load %arg6[%c0_17, %c0_18] : memref<128x128xf32, #tpu.memory_space<vmem>>, vector<128x128xf32>
      tpu.vector_store %arg6[%c0_17, %c0_18], %18 {strides = array<i32>} : memref<128x128xf32, #tpu.memory_space<vmem>>, vector<128x128xf32>,
    } else {
    }
    return
  }
  func.func @transform_0(%arg0: i32, %arg1: i32) -> (i32, i32) {
    %c0_i32 = arith.constant 0 : i32
    return %arg0, %arg1 : i32, i32
  }
  func.func @transform_1(%arg0: i32, %arg1: i32) -> (i32, i32) {
    %c0_i32 = arith.constant 0 : i32
    %c0_i32_0 = arith.constant 0 : i32
    return %arg1, %c0_i32 : i32, i32
  }
  func.func @transform_2(%arg0: i32, %arg1: i32) -> (i32, i32) {
    %c0_i32 = arith.constant 0 : i32
    %c0_i32_0 = arith.constant 0 : i32
    %c0_i32_1 = arith.constant 0 : i32
    return %c0_i32, %c0_i32_0 : i32, i32
  }
  func.func @transform_3(%arg0: i32, %arg1: i32) -> (i32, i32) {
    %c0_i32 = arith.constant 0 : i32
    %c0_i32_0 = arith.constant 0 : i32
    %c0_i32_1 = arith.constant 0 : i32
    return %c0_i32, %c0_i32_0 : i32, i32
  }
  func.func @transform_4(%arg0: i32, %arg1: i32) -> (i32, i32) {
    %c0_i32 = arith.constant 0 : i32
    %c0_i32_0 = arith.constant 0 : i32
    return %arg0, %c0_i32 : i32, i32
  }
}

</mosaic_0001>

<bundles_post_ra>
// kernel: gnn_forward.3
= control target key start
LH: loop header
LB: loop body
LE: loop exit
PB: predicated region body
PF: predicated region fallthrough
CT: control target
= control target key end

     0   :  { %s819_s1 = inlined_call_operand.vmem [shape: bf16[128,128], index: 1, kind: input, shape index: {}]   ;;  %s820_s0 = inlined_call_operand.vmem [shape: bf16[128,128], index: 0, kind: input, shape index: {}]   ;;  %s821_s2 = inlined_call_operand.vmem [shape: bf16[128,128], index: 2, kind: input, shape index: {}]   ;;  %s822_s3 = inlined_call_operand.vmem [shape: f32[1,128], index: 3, kind: input, shape index: {}]   ;;  %s823_s4 = inlined_call_operand.vmem [shape: f32[128,128], index: 4, kind: output, shape index: {}]  }
   0x1   :  { %v647_v0 = vld [vmem:[%s819_s1 + $0x38] sm:$0xff]   ;;  %v648_v1 = vld [vmem:[%s819_s1 + $0x30] sm:$0xff]   ;;  %v649_v2 = vld [vmem:[%s819_s1 + $0x28] sm:$0xff]  }
   0x2   :  { %583 = vmatprep.subr.bf16.mxu0 %v647_v0  ;;  %v650_v3 = vld [vmem:[%s819_s1 + $0x20] sm:$0xff]   ;;  %v651_v5 = vld [vmem:[%s819_s1 + $0x18] sm:$0xff]   ;;  %v652_v6 = vld [vmem:[%s819_s1 + $0x10] sm:$0xff]  }
   0x3   :  { %584 = vmatpush3.bf16.msra.mxu0 %v647_v0  ;;  %v655_v4 = vld [vmem:[%s820_s0] sm:$0xff]   ;;  %v663_v7 = vld [vmem:[%s821_s2 + $0x38] sm:$0xff]   ;;  %v664_v8 = vld [vmem:[%s821_s2 + $0x30] sm:$0xff]  }
   0x4   :  { %585 = vmatprep.subr.bf16.mxu0 %v648_v1  ;;  %599 = vmatprep.mubr.bf16.mxu0 %v655_v4  ;;  %v653_v9 = vld [vmem:[%s819_s1 + $0x8] sm:$0xff]   ;;  %v654_v11 = vld [vmem:[%s819_s1] sm:$0xff]   ;;  %v667_v13 = vld [vmem:[%s821_s2 + $0x18] sm:$0xff]  }
   0x5   :  { %615 = vmatprep.subr.bf16.mxu1 %v663_v7  ;;  %v665_v10 = vld [vmem:[%s821_s2 + $0x28] sm:$0xff]   ;;  %v666_v12 = vld [vmem:[%s821_s2 + $0x20] sm:$0xff]   ;;  %v657_v15 = vld [vmem:[%s820_s0 + $0x10] sm:$0xff]  }
   0x6   :  { %616 = vmatpush3.bf16.msra.mxu1 %v663_v7  ;;  %v656_v14 = vld [vmem:[%s820_s0 + $0x8] sm:$0xff]   ;;  %v668_v16 = vld [vmem:[%s821_s2 + $0x10] sm:$0xff]   ;;  %v658_v17 = vld [vmem:[%s820_s0 + $0x18] sm:$0xff]  }
   0x7   :  { %586 = vmatpush3.bf16.msra.mxu0 %v648_v1  ;;  %617 = vmatprep.subr.bf16.mxu1 %v664_v8  ;;  %v659_v18 = vld [vmem:[%s820_s0 + $0x20] sm:$0xff]   ;;  %v660_v19 = vld [vmem:[%s820_s0 + $0x28] sm:$0xff]   ;;  %v661_v20 = vld [vmem:[%s820_s0 + $0x30] sm:$0xff]  }
   0x8   :  { %587 = vmatprep.subr.bf16.mxu0 %v649_v2  ;;  %v662_v21 = vld [vmem:[%s820_s0 + $0x38] sm:$0xff]   ;;  %v669_v22 = vld [vmem:[%s821_s2 + $0x8] sm:$0xff]   ;;  %v670_v23 = vld [vmem:[%s821_s2] sm:$0xff]  }
   0x9   :  { %v542_v48 = vld [vmem:[%s822_s3] ss:$0 sm:$0xff] }
   0xa   :  { %618 = vmatpush3.bf16.msra.mxu1 %v664_v8 }
   0xb   :  { %588 = vmatpush3.bf16.msra.mxu0 %v649_v2  ;;  %619 = vmatprep.subr.bf16.mxu1 %v665_v10 }
   0xc   :  { %589 = vmatprep.subr.bf16.mxu0 %v650_v3 }
   0xe   :  { %620 = vmatpush3.bf16.msra.mxu1 %v665_v10 }
   0xf   :  { %590 = vmatpush3.bf16.msra.mxu0 %v650_v3  ;;  %621 = vmatprep.subr.bf16.mxu1 %v666_v12 }
  0x10   :  { %591 = vmatprep.subr.bf16.mxu0 %v651_v5 }
  0x12   :  { %622 = vmatpush3.bf16.msra.mxu1 %v666_v12 }
  0x13   :  { %592 = vmatpush3.bf16.msra.mxu0 %v651_v5  ;;  %623 = vmatprep.subr.bf16.mxu1 %v667_v13 }
  0x14   :  { %593 = vmatprep.subr.bf16.mxu0 %v652_v6 }
  0x16   :  { %624 = vmatpush3.bf16.msra.mxu1 %v667_v13 }
  0x17   :  { %594 = vmatpush3.bf16.msra.mxu0 %v652_v6  ;;  %625 = vmatprep.subr.bf16.mxu1 %v668_v16 }
  0x18   :  { %595 = vmatprep.subr.bf16.mxu0 %v653_v9 }
  0x1a   :  { %626 = vmatpush3.bf16.msra.mxu1 %v668_v16 }
  0x1b   :  { %596 = vmatpush3.bf16.msra.mxu0 %v653_v9  ;;  %627 = vmatprep.subr.bf16.mxu1 %v669_v22 }
  0x1c   :  { %597 = vmatprep.subr.bf16.mxu0 %v654_v11 }
  0x1e   :  { %628 = vmatpush3.bf16.msra.mxu1 %v669_v22 }
  0x1f   :  { %598 = vmatpush3.bf16.msra.mxu0 %v654_v11  ;;  %629 = vmatprep.subr.bf16.mxu1 %v670_v23 }
  0x22   :  { %600 = vmatmul.mubr.bf16.vlgmr.msra.gmra.mxu0 %v656_v14  ;;  %630 = vmatpush3.bf16.msra.mxu1 %v670_v23 }
  0x23   :  { %603 = vmatprep.mubr.bf16.mxu0 %v657_v15 }
  0x2a   :  { %604 = vmatmul.mubr.bf16.gmra.mxu0 %v658_v17 }
  0x2b   :  { %607 = vmatprep.mubr.bf16.mxu0 %v659_v18 }
  0x32   :  { %608 = vmatmul.mubr.bf16.gmra.mxu0 %v660_v19 }
  0x33   :  { %611 = vmatprep.mubr.bf16.mxu0 %v661_v20 }
  0x3a   :  { %612 = vmatmul.mubr.bf16.gmra.mxu0 %v662_v21 }
  0xe2   :  { %v601_v24 = vpop.f32.mrf.mxu0 }
  0xe4   :  { %v216_v25 = vpop.f32.mrf.mxu0 }
  0xe6   :  { %v602_v26 = vpop.f32.mrf.mxu0 }
  0xe7   :  { %v331_v29 = vpack.c.bf16 %v602_v26, %v601_v24 }
  0xe8   :  { %v219_v27 = vpop.f32.mrf.mxu0 }
  0xe9   :  { %v330_v28 = vpack.c.bf16 %v219_v27, %v216_v25 }
  0xea   :  { %v605_v30 = vpop.f32.mrf.mxu0 }
  0xeb   :  { %631 = vmatprep.mubr.bf16.mxu1 %v330_v28 }
  0xec   :  { %v232_v31 = vpop.f32.mrf.mxu0  ;;  %632 = vmatmul.mubr.bf16.vlgmr.msra.gmra.mxu1 %v331_v29 }
  0xee   :  { %v606_v32 = vpop.f32.mrf.mxu0 }
  0xef   :  { %v333_v35 = vpack.c.bf16 %v606_v32, %v605_v30 }
  0xf0   :  { %v235_v33 = vpop.f32.mrf.mxu0 }
  0xf1   :  { %v332_v34 = vpack.c.bf16 %v235_v33, %v232_v31 }
  0xf2   :  { %v609_v36 = vpop.f32.mrf.mxu0 }
  0xf3   :  { %635 = vmatprep.mubr.bf16.mxu1 %v332_v34 }
  0xf4   :  { %v248_v37 = vpop.f32.mrf.mxu0  ;;  %636 = vmatmul.mubr.bf16.gmra.mxu1 %v333_v35 }
  0xf6   :  { %v610_v38 = vpop.f32.mrf.mxu0 }
  0xf7   :  { %v335_v41 = vpack.c.bf16 %v610_v38, %v609_v36 }
  0xf8   :  { %v251_v39 = vpop.f32.mrf.mxu0 }
  0xf9   :  { %v334_v40 = vpack.c.bf16 %v251_v39, %v248_v37 }
  0xfa   :  { %v613_v42 = vpop.f32.mrf.mxu0 }
  0xfb   :  { %639 = vmatprep.mubr.bf16.mxu1 %v334_v40 }
  0xfc   :  { %v264_v43 = vpop.f32.mrf.mxu0  ;;  %640 = vmatmul.mubr.bf16.gmra.mxu1 %v335_v41 }
  0xfe   :  { %v614_v44 = vpop.f32.mrf.mxu0 }
  0xff   :  { %v337_v47 = vpack.c.bf16 %v614_v44, %v613_v42 }
 0x100   :  { %v267_v45 = vpop.f32.mrf.mxu0 }
 0x101   :  { %v336_v46 = vpack.c.bf16 %v267_v45, %v264_v43 }
 0x103   :  { %643 = vmatprep.mubr.bf16.mxu1 %v336_v46 }
 0x104   :  { %644 = vmatmul.mubr.bf16.gmra.mxu1 %v337_v47 }
 0x1ac   :  { %v633_v49 = vpop.f32.mrf.mxu1 }
 0x1ad   :  { %v452_v50 = vadd.f32 %v633_v49, %v542_v48 }
 0x1ae   :  { %v443_v51 = vpop.f32.mrf.mxu1 }
 0x1af   :  { %508 = vst [vmem:[%s823_s4 + $0x10] sm:$0xff] %v452_v50  ;;  %v444_v52 = vadd.f32 %v542_v48, %v443_v51 }
 0x1b0   :  { %v634_v53 = vpop.f32.mrf.mxu1 }
 0x1b1   :  { %506 = vst [vmem:[%s823_s4] sm:$0xff] %v444_v52  ;;  %v455_v54 = vadd.f32 %v634_v53, %v542_v48 }
 0x1b2   :  { %v446_v55 = vpop.f32.mrf.mxu1 }
 0x1b3   :  { %509 = vst [vmem:[%s823_s4 + $0x18] sm:$0xff] %v455_v54  ;;  %v447_v56 = vadd.f32 %v542_v48, %v446_v55 }
 0x1b4   :  { %v637_v57 = vpop.f32.mrf.mxu1 }
 0x1b5   :  { %507 = vst [vmem:[%s823_s4 + $0x8] sm:$0xff] %v447_v56  ;;  %v468_v58 = vadd.f32 %v637_v57, %v542_v48 }
 0x1b6   :  { %v459_v59 = vpop.f32.mrf.mxu1 }
 0x1b7   :  { %512 = vst [vmem:[%s823_s4 + $0x30] sm:$0xff] %v468_v58  ;;  %v460_v60 = vadd.f32 %v542_v48, %v459_v59 }
 0x1b8   :  { %v638_v61 = vpop.f32.mrf.mxu1 }
 0x1b9   :  { %510 = vst [vmem:[%s823_s4 + $0x20] sm:$0xff] %v460_v60  ;;  %v471_v62 = vadd.f32 %v638_v61, %v542_v48 }
 0x1ba   :  { %v462_v63 = vpop.f32.mrf.mxu1 }
 0x1bb   :  { %513 = vst [vmem:[%s823_s4 + $0x38] sm:$0xff] %v471_v62  ;;  %v463_v0 = vadd.f32 %v542_v48, %v462_v63 }
 0x1bc   :  { %v641_v1 = vpop.f32.mrf.mxu1 }
 0x1bd   :  { %511 = vst [vmem:[%s823_s4 + $0x28] sm:$0xff] %v463_v0  ;;  %v484_v2 = vadd.f32 %v641_v1, %v542_v48 }
 0x1be   :  { %v475_v3 = vpop.f32.mrf.mxu1 }
 0x1bf   :  { %516 = vst [vmem:[%s823_s4 + $0x50] sm:$0xff] %v484_v2  ;;  %v476_v4 = vadd.f32 %v542_v48, %v475_v3 }
 0x1c0   :  { %v642_v5 = vpop.f32.mrf.mxu1 }
 0x1c1   :  { %514 = vst [vmem:[%s823_s4 + $0x40] sm:$0xff] %v476_v4  ;;  %v487_v6 = vadd.f32 %v642_v5, %v542_v48 }
 0x1c2   :  { %v478_v7 = vpop.f32.mrf.mxu1 }
 0x1c3   :  { %517 = vst [vmem:[%s823_s4 + $0x58] sm:$0xff] %v487_v6  ;;  %v479_v8 = vadd.f32 %v542_v48, %v478_v7 }
 0x1c4   :  { %v645_v9 = vpop.f32.mrf.mxu1 }
 0x1c5   :  { %515 = vst [vmem:[%s823_s4 + $0x48] sm:$0xff] %v479_v8  ;;  %v500_v10 = vadd.f32 %v645_v9, %v542_v48 }
 0x1c6   :  { %v491_v11 = vpop.f32.mrf.mxu1 }
 0x1c7   :  { %520 = vst [vmem:[%s823_s4 + $0x70] sm:$0xff] %v500_v10  ;;  %v492_v12 = vadd.f32 %v542_v48, %v491_v11 }
 0x1c8   :  { %v646_v13 = vpop.f32.mrf.mxu1 }
 0x1c9   :  { %518 = vst [vmem:[%s823_s4 + $0x60] sm:$0xff] %v492_v12  ;;  %v503_v14 = vadd.f32 %v646_v13, %v542_v48 }
 0x1ca   :  { %v494_v15 = vpop.f32.mrf.mxu1 }
 0x1cb   :  { %521 = vst [vmem:[%s823_s4 + $0x78] sm:$0xff] %v503_v14  ;;  %v495_v16 = vadd.f32 %v542_v48, %v494_v15 }
 0x1cd   :  { %519 = vst [vmem:[%s823_s4 + $0x68] sm:$0xff] %v495_v16 }

// kernel: gnn_forward.2
= control target key start
LH: loop header
LB: loop body
LE: loop exit
PB: predicated region body
PF: predicated region fallthrough
CT: control target
= control target key end

     0   :  { %s954_s1 = inlined_call_operand.vmem [shape: bf16[128,128], index: 1, kind: input, shape index: {}]   ;;  %s955_s0 = inlined_call_operand.vmem [shape: bf16[128,128], index: 0, kind: input, shape index: {}]   ;;  %s956_s2 = inlined_call_operand.vmem [shape: bf16[128,128], index: 2, kind: input, shape index: {}]   ;;  %s957_s3 = inlined_call_operand.vmem [shape: f32[1,128], index: 3, kind: input, shape index: {}]   ;;  %s958_s4 = inlined_call_operand.vmem [shape: bf16[128,128], index: 4, kind: output, shape index: {}]  }
   0x1   :  { %v806_v0 = vld [vmem:[%s954_s1 + $0x38] sm:$0xff]   ;;  %v807_v1 = vld [vmem:[%s954_s1 + $0x30] sm:$0xff]   ;;  %v808_v2 = vld [vmem:[%s954_s1 + $0x28] sm:$0xff]  }
   0x2   :  { %742 = vmatprep.subr.bf16.mxu0 %v806_v0  ;;  %v809_v3 = vld [vmem:[%s954_s1 + $0x20] sm:$0xff]   ;;  %v810_v5 = vld [vmem:[%s954_s1 + $0x18] sm:$0xff]   ;;  %v811_v6 = vld [vmem:[%s954_s1 + $0x10] sm:$0xff]  }
   0x3   :  { %743 = vmatpush3.bf16.msra.mxu0 %v806_v0  ;;  %v814_v4 = vld [vmem:[%s955_s0] sm:$0xff]   ;;  %v822_v7 = vld [vmem:[%s956_s2 + $0x38] sm:$0xff]   ;;  %v823_v8 = vld [vmem:[%s956_s2 + $0x30] sm:$0xff]  }
   0x4   :  { %744 = vmatprep.subr.bf16.mxu0 %v807_v1  ;;  %758 = vmatprep.mubr.bf16.mxu0 %v814_v4  ;;  %v812_v9 = vld [vmem:[%s954_s1 + $0x8] sm:$0xff]   ;;  %v813_v11 = vld [vmem:[%s954_s1] sm:$0xff]   ;;  %v826_v13 = vld [vmem:[%s956_s2 + $0x18] sm:$0xff]  }
   0x5   :  { %774 = vmatprep.subr.bf16.mxu1 %v822_v7  ;;  %v824_v10 = vld [vmem:[%s956_s2 + $0x28] sm:$0xff]   ;;  %v825_v12 = vld [vmem:[%s956_s2 + $0x20] sm:$0xff]   ;;  %v816_v15 = vld [vmem:[%s955_s0 + $0x10] sm:$0xff]  }
   0x6   :  { %775 = vmatpush3.bf16.msra.mxu1 %v822_v7  ;;  %v815_v14 = vld [vmem:[%s955_s0 + $0x8] sm:$0xff]   ;;  %v827_v16 = vld [vmem:[%s956_s2 + $0x10] sm:$0xff]   ;;  %v817_v17 = vld [vmem:[%s955_s0 + $0x18] sm:$0xff]  }
   0x7   :  { %745 = vmatpush3.bf16.msra.mxu0 %v807_v1  ;;  %776 = vmatprep.subr.bf16.mxu1 %v823_v8  ;;  %v818_v18 = vld [vmem:[%s955_s0 + $0x20] sm:$0xff]   ;;  %v819_v19 = vld [vmem:[%s955_s0 + $0x28] sm:$0xff]   ;;  %v820_v20 = vld [vmem:[%s955_s0 + $0x30] sm:$0xff]  }
   0x8   :  { %746 = vmatprep.subr.bf16.mxu0 %v808_v2  ;;  %v821_v21 = vld [vmem:[%s955_s0 + $0x38] sm:$0xff]   ;;  %v828_v22 = vld [vmem:[%s956_s2 + $0x8] sm:$0xff]   ;;  %v829_v23 = vld [vmem:[%s956_s2] sm:$0xff]  }
   0x9   :  { %v622_v49 = vld [vmem:[%s957_s3] ss:$0 sm:$0xff] }
   0xa   :  { %777 = vmatpush3.bf16.msra.mxu1 %v823_v8 }
   0xb   :  { %747 = vmatpush3.bf16.msra.mxu0 %v808_v2  ;;  %778 = vmatprep.subr.bf16.mxu1 %v824_v10 }
   0xc   :  { %748 = vmatprep.subr.bf16.mxu0 %v809_v3 }
   0xe   :  { %779 = vmatpush3.bf16.msra.mxu1 %v824_v10 }
   0xf   :  { %749 = vmatpush3.bf16.msra.mxu0 %v809_v3  ;;  %780 = vmatprep.subr.bf16.mxu1 %v825_v12 }
  0x10   :  { %750 = vmatprep.subr.bf16.mxu0 %v810_v5 }
  0x12   :  { %781 = vmatpush3.bf16.msra.mxu1 %v825_v12 }
  0x13   :  { %751 = vmatpush3.bf16.msra.mxu0 %v810_v5  ;;  %782 = vmatprep.subr.bf16.mxu1 %v826_v13 }
  0x14   :  { %752 = vmatprep.subr.bf16.mxu0 %v811_v6 }
  0x16   :  { %783 = vmatpush3.bf16.msra.mxu1 %v826_v13 }
  0x17   :  { %753 = vmatpush3.bf16.msra.mxu0 %v811_v6  ;;  %784 = vmatprep.subr.bf16.mxu1 %v827_v16 }
  0x18   :  { %754 = vmatprep.subr.bf16.mxu0 %v812_v9 }
  0x1a   :  { %785 = vmatpush3.bf16.msra.mxu1 %v827_v16 }
  0x1b   :  { %755 = vmatpush3.bf16.msra.mxu0 %v812_v9  ;;  %786 = vmatprep.subr.bf16.mxu1 %v828_v22 }
  0x1c   :  { %756 = vmatprep.subr.bf16.mxu0 %v813_v11 }
  0x1e   :  { %787 = vmatpush3.bf16.msra.mxu1 %v828_v22 }
  0x1f   :  { %757 = vmatpush3.bf16.msra.mxu0 %v813_v11  ;;  %788 = vmatprep.subr.bf16.mxu1 %v829_v23 }
  0x22   :  { %759 = vmatmul.mubr.bf16.vlgmr.msra.gmra.mxu0 %v815_v14  ;;  %789 = vmatpush3.bf16.msra.mxu1 %v829_v23 }
  0x23   :  { %762 = vmatprep.mubr.bf16.mxu0 %v816_v15 }
  0x2a   :  { %763 = vmatmul.mubr.bf16.gmra.mxu0 %v817_v17 }
  0x2b   :  { %766 = vmatprep.mubr.bf16.mxu0 %v818_v18 }
  0x32   :  { %767 = vmatmul.mubr.bf16.gmra.mxu0 %v819_v19 }
  0x33   :  { %770 = vmatprep.mubr.bf16.mxu0 %v820_v20 }
  0x3a   :  { %771 = vmatmul.mubr.bf16.gmra.mxu0 %v821_v21 }
  0xe2   :  { %v760_v24 = vpop.f32.mrf.mxu0 }
  0xe4   :  { %v216_v25 = vpop.f32.mrf.mxu0 }
  0xe6   :  { %v761_v26 = vpop.f32.mrf.mxu0 }
  0xe7   :  { %v331_v29 = vpack.c.bf16 %v761_v26, %v760_v24 }
  0xe8   :  { %v219_v27 = vpop.f32.mrf.mxu0 }
  0xe9   :  { %v330_v28 = vpack.c.bf16 %v219_v27, %v216_v25 }
  0xea   :  { %v764_v30 = vpop.f32.mrf.mxu0 }
  0xeb   :  { %790 = vmatprep.mubr.bf16.mxu1 %v330_v28 }
  0xec   :  { %v232_v31 = vpop.f32.mrf.mxu0  ;;  %791 = vmatmul.mubr.bf16.vlgmr.msra.gmra.mxu1 %v331_v29 }
  0xee   :  { %v765_v32 = vpop.f32.mrf.mxu0 }
  0xef   :  { %v333_v35 = vpack.c.bf16 %v765_v32, %v764_v30 }
  0xf0   :  { %v235_v33 = vpop.f32.mrf.mxu0 }
  0xf1   :  { %v332_v34 = vpack.c.bf16 %v235_v33, %v232_v31 }
  0xf2   :  { %v768_v36 = vpop.f32.mrf.mxu0 }
  0xf3   :  { %794 = vmatprep.mubr.bf16.mxu1 %v332_v34 }
  0xf4   :  { %v248_v37 = vpop.f32.mrf.mxu0  ;;  %795 = vmatmul.mubr.bf16.gmra.mxu1 %v333_v35 }
  0xf6   :  { %v769_v38 = vpop.f32.mrf.mxu0 }
  0xf7   :  { %v335_v41 = vpack.c.bf16 %v769_v38, %v768_v36 }
  0xf8   :  { %v251_v39 = vpop.f32.mrf.mxu0 }
  0xf9   :  { %v334_v40 = vpack.c.bf16 %v251_v39, %v248_v37 }
  0xfa   :  { %v772_v42 = vpop.f32.mrf.mxu0 }
  0xfb   :  { %798 = vmatprep.mubr.bf16.mxu1 %v334_v40 }
  0xfc   :  { %v264_v43 = vpop.f32.mrf.mxu0  ;;  %799 = vmatmul.mubr.bf16.gmra.mxu1 %v335_v41 }
  0xfe   :  { %v773_v44 = vpop.f32.mrf.mxu0 }
  0xff   :  { %v337_v47 = vpack.c.bf16 %v773_v44, %v772_v42 }
 0x100   :  { %v267_v45 = vpop.f32.mrf.mxu0 }
 0x101   :  { %v336_v46 = vpack.c.bf16 %v267_v45, %v264_v43 }
 0x103   :  { %802 = vmatprep.mubr.bf16.mxu1 %v336_v46 }
 0x104   :  { %803 = vmatmul.mubr.bf16.gmra.mxu1 %v337_v47 }
 0x1ac   :  { %v792_v48 = vpop.f32.mrf.mxu1 }
 0x1ad   :  { %v452_v51 = vadd.f32 %v792_v48, %v622_v49 }
 0x1ae   :  { %v443_v50 = vpop.f32.mrf.mxu1 }
 0x1af   :  { %v444_v53 = vadd.f32 %v622_v49, %v443_v50  ;;  %v508_v56 = vmax.f32 %v452_v51, 0.0 }
 0x1b0   :  { %v793_v52 = vpop.f32.mrf.mxu1 }
 0x1b1   :  { %v455_v54 = vadd.f32 %v793_v52, %v622_v49  ;;  %v506_v60 = vmax.f32 %v444_v53, 0.0 }
 0x1b2   :  { %v446_v55 = vpop.f32.mrf.mxu1 }
 0x1b3   :  { %v509_v57 = vmax.f32 %v455_v54, 0.0  ;;  %v447_v58 = vadd.f32 %v622_v49, %v446_v55 }
 0x1b4   :  { %v796_v59 = vpop.f32.mrf.mxu1 }
 0x1b5   :  { %v671_v61 = vpack.c.bf16 %v509_v57, %v508_v56  ;;  %v507_v62 = vmax.f32 %v447_v58, 0.0  ;;  %v468_v1 = vadd.f32 %v796_v59, %v622_v49 }
 0x1b6   :  { %v459_v63 = vpop.f32.mrf.mxu1 }
 0x1b7   :  { %703 = vst [vmem:[%s958_s4 + $0x8] sm:$0xff] %v671_v61   ;;  %v666_v0 = vpack.c.bf16 %v507_v62, %v506_v60  ;;  %v460_v3 = vadd.f32 %v622_v49, %v459_v63  ;;  %v512_v6 = vmax.f32 %v468_v1, 0.0 }
 0x1b8   :  { %v797_v2 = vpop.f32.mrf.mxu1 }
 0x1b9   :  { %667 = vst [vmem:[%s958_s4] sm:$0xff] %v666_v0   ;;  %v471_v4 = vadd.f32 %v797_v2, %v622_v49  ;;  %v510_v10 = vmax.f32 %v460_v3, 0.0 }
 0x1ba   :  { %v462_v5 = vpop.f32.mrf.mxu1 }
 0x1bb   :  { %v513_v7 = vmax.f32 %v471_v4, 0.0  ;;  %v463_v8 = vadd.f32 %v622_v49, %v462_v5 }
 0x1bc   :  { %v800_v9 = vpop.f32.mrf.mxu1 }
 0x1bd   :  { %v681_v11 = vpack.c.bf16 %v513_v7, %v512_v6  ;;  %v511_v12 = vmax.f32 %v463_v8, 0.0  ;;  %v484_v15 = vadd.f32 %v800_v9, %v622_v49 }
 0x1be   :  { %v475_v13 = vpop.f32.mrf.mxu1 }
 0x1bf   :  { %705 = vst [vmem:[%s958_s4 + $0x18] sm:$0xff] %v681_v11   ;;  %v676_v14 = vpack.c.bf16 %v511_v12, %v510_v10  ;;  %v476_v17 = vadd.f32 %v622_v49, %v475_v13  ;;  %v516_v20 = vmax.f32 %v484_v15, 0.0 }
 0x1c0   :  { %v801_v16 = vpop.f32.mrf.mxu1 }
 0x1c1   :  { %704 = vst [vmem:[%s958_s4 + $0x10] sm:$0xff] %v676_v14   ;;  %v487_v18 = vadd.f32 %v801_v16, %v622_v49  ;;  %v514_v24 = vmax.f32 %v476_v17, 0.0 }
 0x1c2   :  { %v478_v19 = vpop.f32.mrf.mxu1 }
 0x1c3   :  { %v517_v21 = vmax.f32 %v487_v18, 0.0  ;;  %v479_v22 = vadd.f32 %v622_v49, %v478_v19 }
 0x1c4   :  { %v804_v23 = vpop.f32.mrf.mxu1 }
 0x1c5   :  { %v691_v25 = vpack.c.bf16 %v517_v21, %v516_v20  ;;  %v515_v26 = vmax.f32 %v479_v22, 0.0  ;;  %v500_v29 = vadd.f32 %v804_v23, %v622_v49 }
 0x1c6   :  { %v491_v27 = vpop.f32.mrf.mxu1 }
 0x1c7   :  { %707 = vst [vmem:[%s958_s4 + $0x28] sm:$0xff] %v691_v25   ;;  %v686_v28 = vpack.c.bf16 %v515_v26, %v514_v24  ;;  %v492_v31 = vadd.f32 %v622_v49, %v491_v27  ;;  %v520_v34 = vmax.f32 %v500_v29, 0.0 }
 0x1c8   :  { %v805_v30 = vpop.f32.mrf.mxu1 }
 0x1c9   :  { %706 = vst [vmem:[%s958_s4 + $0x20] sm:$0xff] %v686_v28   ;;  %v503_v32 = vadd.f32 %v805_v30, %v622_v49  ;;  %v518_v37 = vmax.f32 %v492_v31, 0.0 }
 0x1ca   :  { %v494_v33 = vpop.f32.mrf.mxu1 }
 0x1cb   :  { %v521_v35 = vmax.f32 %v503_v32, 0.0  ;;  %v495_v36 = vadd.f32 %v622_v49, %v494_v33 }
 0x1cd   :  { %v701_v38 = vpack.c.bf16 %v521_v35, %v520_v34  ;;  %v519_v39 = vmax.f32 %v495_v36, 0.0 }
 0x1cf   :  { %709 = vst [vmem:[%s958_s4 + $0x38] sm:$0xff] %v701_v38   ;;  %v696_v40 = vpack.c.bf16 %v519_v39, %v518_v37 }
 0x1d1   :  { %708 = vst [vmem:[%s958_s4 + $0x30] sm:$0xff] %v696_v40  }

</bundles_post_ra>
